<compile_context>
chip_gen: v7x
topology: tpu7x:2x2x1
jax: 0.10.0
libtpu: 0.0.40
codegen_flags: <defaults>
</compile_context>

<pallas_src>
import functools

import jax
import jax.numpy as jnp
from jax.experimental import pallas as pl
from jax.experimental.pallas import tpu as pltpu


def _rmsnorm_kernel(x_ref, w_ref, o_ref, *, eps: float, inv_dim: float,
                    native_scale: bool):
    # x_ref: (tile_rows, dim), w_ref: (1, dim), o_ref: (tile_rows, dim)
    x = x_ref[...]
    xf = x.astype(jnp.float32)
    # sum * (1/dim): inv_dim is a compile-time constant (no per-tile divide).
    mean_sq = jnp.sum(xf * xf, axis=-1, keepdims=True) * inv_dim
    inv_rms = jax.lax.rsqrt(mean_sq + eps)   # EUP slot, free next to the vmuls
    w = w_ref[...]                            # already in the scaling dtype
    if native_scale:
        # bf16/fp8 on v6e/v7x: scale + store in the packed native dtype so
        # the VALU slot doesn't become the bottleneck at 3.2 TB/s HBM.
        o_ref[...] = x * inv_rms.astype(x.dtype) * w
    else:
        o_ref[...] = (xf * inv_rms * w).astype(o_ref.dtype)


def _device_kind() -> str:
    try:
        return jax.devices()[0].device_kind.lower()
    except Exception:
        return ""


def _vmem_budgets(device_kind: str) -> tuple[int, int]:
    """Return (vmem_limit_bytes, tile_budget_bytes) sized for this chip."""
    try:
        cap = int(pltpu.get_tpu_info().vmem_capacity_bytes)
    except Exception:
        cap = 64 << 20  # conservative fallback (v7x per-TC capacity)
    # v7x has 64 MiB per TensorCore; the capacity query may report per-chip
    # totals, so clamp explicitly before deriving the scoped limit.
    if "v7" in device_kind:
        cap = min(cap, 64 << 20)
    # Raise the scoped limit above the 16/32 MiB defaults but leave headroom
    # below physical capacity (v5e/v6e 128 MiB -> 96 MiB; v7x 64 MiB -> 48 MiB).
    limit = min((cap * 3) // 4, 96 << 20)
    # Budget for the data tiles themselves (double-buffered in/out + f32
    # working copies), leaving ~20% slack inside the scoped limit.
    tile_budget = int(limit * 0.8)
    return int(limit), int(tile_budget)


def _pick_tile_rows(rows: int, dim: int, dtype, tile_budget_bytes: int) -> int:
    itemsize = jnp.dtype(dtype).itemsize
    # Per-row VMEM footprint:
    #   2x double-buffered input tile + 2x double-buffered output tile
    #   + f32 intermediates: one for f32 inputs, two for sub-f32 inputs
    #     (upcast copy + squared/scaled copy before any downcast).
    f32_extra = 8 if itemsize < 4 else 4
    per_row_bytes = dim * (4 * itemsize + f32_extra)
    sublane = max(8, 32 // itemsize)      # 8 for f32, 16 for bf16, 32 for fp8
    max_rows_by_vmem = max(tile_budget_bytes // per_row_bytes, sublane)
    rows_rounded = ((rows + sublane - 1) // sublane) * sublane
    # Cap at 4096 (not 1024): memory-bound kernel, bigger tiles amortize the
    # ~0.35 us/step pipeline overhead; VMEM budget is the real limit.
    tile = min(4096, int(max_rows_by_vmem), rows_rounded)
    tile = max((tile // sublane) * sublane, sublane)
    return int(tile)


def rms_norm(x: jax.Array, weight: jax.Array, eps: float = 1e-6,
             tile_rows: int | None = None) -> jax.Array:
    """RMSNorm over the last dimension of x."""
    orig_shape = x.shape
    dim = orig_shape[-1]
    assert weight.shape == (dim,)

    device_kind = _device_kind()
    itemsize = jnp.dtype(x.dtype).itemsize
    # Native-dtype scaling only where the VPU has packed support (v6e/v7x);
    # v5e has no bf16 VALU, f32 inputs use the f32 path anyway.
    native_scale = (itemsize < 4) and ("v5" not in device_kind)
    w_dtype = x.dtype if native_scale else jnp.float32

    x2d = x.reshape(-1, dim)
    rows = x2d.shape[0]

    # Keep the lane axis dense: pad dim up to a multiple of 128 so output
    # stores are full unmasked vst.  Zero padding is exact (adds nothing to
    # the sum of squares; inv_dim uses the original dim; padded weight = 0).
    dim_p = ((dim + 127) // 128) * 128
    if dim_p != dim:
        x2d = jnp.pad(x2d, ((0, 0), (0, dim_p - dim)))
        w1d = jnp.pad(weight.astype(w_dtype), (0, dim_p - dim))
    else:
        w1d = weight.astype(w_dtype)
    w2d = w1d.reshape(1, dim_p)

    vmem_limit, tile_budget = _vmem_budgets(device_kind)
    if tile_rows is None:
        tile_rows = _pick_tile_rows(rows, dim_p, x.dtype, tile_budget)

    # No row padding: Pallas clips the partial last block (rows are
    # independent; out-of-bounds writes in the final block are dropped).
    grid = (pl.cdiv(rows, tile_rows),)

    # NOTE: the single "parallel" row axis is expected to shard across both
    # TensorCores on v7x (megacore); verify in xprof when tuning on v7x.
    out = pl.pallas_call(
        functools.partial(_rmsnorm_kernel, eps=float(eps),
                          inv_dim=float(1.0 / dim),
                          native_scale=native_scale),
        out_shape=jax.ShapeDtypeStruct((rows, dim_p), x.dtype),
        grid_spec=pltpu.PrefetchScalarGridSpec(
            num_scalar_prefetch=0,
            grid=grid,
            in_specs=[
                pl.BlockSpec((tile_rows, dim_p), lambda i: (i, 0)),
                pl.BlockSpec((1, dim_p), lambda i: (0, 0)),
            ],
            out_specs=pl.BlockSpec((tile_rows, dim_p), lambda i: (i, 0)),
        ),
        compiler_params=pltpu.CompilerParams(
            dimension_semantics=("parallel",),
            vmem_limit_bytes=vmem_limit,
        ),
    )(x2d, w2d)

    if dim_p != dim:
        out = out[:, :dim]
    return out.reshape(orig_shape)


def _ref_rms_norm(x, weight, eps):
    xf = x.astype(jnp.float32)
    ms = jnp.mean(xf * xf, axis=-1, keepdims=True)
    return ((xf * jax.lax.rsqrt(ms + eps)) * weight.astype(jnp.float32)
            ).astype(x.dtype)


if __name__ == "__main__":
    key = jax.random.PRNGKey(0)
    eps = 1e-6

    # Small, lane-dense test shape (dim multiple of 128 keeps stores unmasked).
    batch, seq, dim = 2, 8, 128
    x = jax.random.normal(key, (batch, seq, dim), dtype=jnp.float32)
    # Deterministic parameter init: ones (matching nn.Parameter(torch.ones(dim)))
    # plus a deterministic perturbation so the scaling is actually exercised.
    weight = jnp.ones((dim,), dtype=jnp.float32) + 0.01 * jnp.arange(
        dim, dtype=jnp.float32)

    y = rms_norm(x, weight, eps=eps)
    jax.block_until_ready(y)
    ref = _ref_rms_norm(x, weight, eps)
    assert jnp.allclose(y, ref, atol=1e-5, rtol=1e-5), "mismatch vs reference"

    # Row count not a multiple of the tile -> exercises the clipped
    # partial-last-block path (no row padding round-trip).
    x2 = jax.random.normal(jax.random.PRNGKey(1), (3, 5, dim),
                           dtype=jnp.float32)
    y2 = rms_norm(x2, weight, eps=eps)
    jax.block_until_ready(y2)
    ref2 = _ref_rms_norm(x2, weight, eps)
    assert jnp.allclose(y2, ref2, atol=1e-5, rtol=1e-5), "mismatch (partial block)"

    # bf16 input -> exercises the native-dtype scaling path (looser tolerance
    # because the two scale muls stay in bf16 on v6e/v7x).
    x3 = jax.random.normal(jax.random.PRNGKey(2), (4, 8, dim)).astype(
        jnp.bfloat16)
    y3 = rms_norm(x3, weight.astype(jnp.bfloat16), eps=eps)
    jax.block_until_ready(y3)
    ref3 = _ref_rms_norm(x3, weight.astype(jnp.bfloat16), eps)
    assert jnp.allclose(y3.astype(jnp.float32), ref3.astype(jnp.float32),
                        atol=3e-2, rtol=3e-2), "mismatch (bf16 native scale)"

    # dim not a multiple of 128 -> exercises the lane-padding path.
    dim4 = 96
    x4 = jax.random.normal(jax.random.PRNGKey(3), (2, 7, dim4),
                           dtype=jnp.float32)
    w4 = jnp.ones((dim4,), dtype=jnp.float32) + 0.02 * jnp.arange(
        dim4, dtype=jnp.float32)
    y4 = rms_norm(x4, w4, eps=eps)
    jax.block_until_ready(y4)
    ref4 = _ref_rms_norm(x4, w4, eps)
    assert jnp.allclose(y4, ref4, atol=1e-5, rtol=1e-5), "mismatch (padded dim)"

    print("KERNEL_OK")
</pallas_src>

<mosaic_0001>
module attributes {stable_mosaic.version = 11 : i64} {
  func.func @_rmsnorm_kernel(%arg0: i32, %arg1: memref<16x128xf32, #tpu.memory_space<vmem>>, %arg2: memref<1x128xf32, #tpu.memory_space<vmem>>, %arg3: memref<16x128xf32, #tpu.memory_space<vmem>>) attributes {dimension_semantics = [#tpu.dimension_semantics<parallel>], iteration_bounds = array<i64: 1>, scalar_prefetch = 0 : i64, scratch_operands = 0 : i64, tpu.core_type = #tpu.core_type<tc>, window_params = [{transform_indices = @transform_0, window_bounds = array<i64: 16, 128>}, {pipeline_mode = #tpu.pipeline_mode<synchronous>, transform_indices = @transform_1, window_bounds = array<i64: 1, 128>}, {transform_indices = @transform_2, window_bounds = array<i64: 16, 128>}]} {
    %c0 = arith.constant 0 : index
    %c0_0 = arith.constant 0 : index
    %0 = vector.load %arg1[%c0, %c0_0] : memref<16x128xf32, #tpu.memory_space<vmem>>, vector<16x128xf32>
    %1 = arith.mulf %0, %0 : vector<16x128xf32>
    %cst = arith.constant dense<0.000000e+00> : vector<16xf32>
    %2 = vector.multi_reduction <add>, %1, %cst [1] : vector<16x128xf32> to vector<16xf32>
    %3 = vector.shape_cast %2 : vector<16xf32> to vector<16x1xf32>
    %cst_1 = arith.constant 7.812500e-03 : f32
    %4 = vector.broadcast %cst_1 : f32 to vector<16x1xf32>
    %5 = arith.mulf %3, %4 : vector<16x1xf32>
    %cst_2 = arith.constant 9.99999997E-7 : f32
    %6 = vector.broadcast %cst_2 : f32 to vector<16x1xf32>
    %7 = arith.addf %5, %6 : vector<16x1xf32>
    %8 = math.rsqrt %7 : vector<16x1xf32>
    %c0_3 = arith.constant 0 : index
    %c0_4 = arith.constant 0 : index
    %9 = vector.load %arg2[%c0_3, %c0_4] : memref<1x128xf32, #tpu.memory_space<vmem>>, vector<1x128xf32>
    %10 = vector.broadcast %8 : vector<16x1xf32> to vector<16x128xf32>
    %11 = arith.mulf %0, %10 : vector<16x128xf32>
    %12 = vector.broadcast %9 : vector<1x128xf32> to vector<16x128xf32>
    %13 = arith.mulf %11, %12 : vector<16x128xf32>
    %c0_5 = arith.constant 0 : index
    %c0_6 = arith.constant 0 : index
    %14 = vector.load %arg3[%c0_5, %c0_6] : memref<16x128xf32, #tpu.memory_space<vmem>>, vector<16x128xf32>
    tpu.vector_store %arg3[%c0_5, %c0_6], %13 {strides = array<i32>} : memref<16x128xf32, #tpu.memory_space<vmem>>, vector<16x128xf32>,
    return
  }
  func.func @transform_0(%arg0: i32) -> (i32, i32) {
    %c0_i32 = arith.constant 0 : i32
    %c0_i32_0 = arith.constant 0 : i32
    return %arg0, %c0_i32 : i32, i32
  }
  func.func @transform_1(%arg0: i32) -> (i32, i32) {
    %c0_i32 = arith.constant 0 : i32
    %c0_i32_0 = arith.constant 0 : i32
    %c0_i32_1 = arith.constant 0 : i32
    return %c0_i32, %c0_i32_0 : i32, i32
  }
  func.func @transform_2(%arg0: i32) -> (i32, i32) {
    %c0_i32 = arith.constant 0 : i32
    %c0_i32_0 = arith.constant 0 : i32
    return %arg0, %c0_i32 : i32, i32
  }
}

</mosaic_0001>

<bundles_post_ra>
// kernel: tpu_custom_call.1
= control target key start
LH: loop header
LB: loop body
LE: loop exit
PB: predicated region body
PF: predicated region fallthrough
CT: control target
= control target key end

     0   :  { %7 = vsyncpa [#allocation3], 0  ;;  %s179_s0 = inlined_call_operand.hbm [shape: f32[16,128], index: 0, kind: input, shape index: {}]   ;;  %s180_s1 = inlined_call_operand.vmem [shape: f32[1,128], index: 1, kind: input, shape index: {}]   ;;  %s181_s2 = inlined_call_operand.hbm [shape: f32[16,128], index: 2, kind: output, shape index: {}]  }
   0x1   :  { %8 = vsyncpa [#allocation4], 0  ;;  %s127_s9 = smov [#allocation2]   ;;  %s79_s13 = scalar_lea.hbm %s179_s0, 256 }
   0x2   :  { %s14_s10 = sshll.u32 %s127_s9, 4  ;;  %p80_p0 = scmp.ne.s32.totalorder %s179_s0, %s79_s13  ;;  %s15_s10 = int_to_ptr.vmem [resolvable:$true] %s14_s10 }
   0x3   :  { %p83_p1 = scmp.lt.u32.totalorder %s79_s13, %s179_s0 }
   0x5   :  { %p85_p2 = pnand %p83_p1, %p80_p0 }
   0x7   :  { %88 = shalt.err (!%p85_p2)
}
   0x8   :  { %s89_s18 = scalar_lea.vmem %s15_s10, 256  ;;  %p94_p4 = scmp.lt.s32.totalorder %s15_s10, %s15_s10 }
   0x9   :  { %p90_p3 = scmp.ne.s32.totalorder %s15_s10, %s89_s18  ;;  %p95_p5 = scmp.lt.s32.totalorder %s89_s18, %s89_s18 }
   0xb   :  { %p96_p6 = por %p95_p5, %p94_p4 }
   0xd   :  { %p97_p7 = pnand %p96_p6, %p90_p3 }
   0xf   :  { %100 = shalt.err (!%p97_p7)
}
  0x10   :  { %s128_s19 = smov 128   ;;  %s129_s20 = smov 8  }
  0x11   :  { %20 = dma.hbm_to_vmem [thread:$0]  %s179_s0, 256, %s15_s10, [#allocation3], %s128_s19, %s128_s19, %s129_s20  }
  0x12   :  { %123 = dma.done.wait [#allocation3], 256  }
  0x13   :  { %124 = vsyncadd [#allocation3], 4294967040  ;;  %v26_v0 = vld [vmem:[#allocation2] sm:$0xff]  ;;  %v27_v1 = vld [vmem:[#allocation2 + $0x8] sm:$0xff]  ;;  %s130_s0 = smov [#allocation5]  }
  0x14   :  { %v28_v2 = vmul.f32 %v26_v0, %v26_v0  ;;  %v29_v3 = vmul.f32 %v27_v1, %v27_v1  ;;  %v70_v11 = vld [vmem:[%s180_s1] ss:$0 sm:$0xff]  ;;  %s58_s25 = sshll.u32 %s130_s0, 4  ;;  %s59_s25 = int_to_ptr.vmem [resolvable:$true] %s58_s25 }
  0x15   :  { %s101_s26 = scalar_lea.vmem %s59_s25, 256  ;;  %p106_p9 = scmp.lt.s32.totalorder %s59_s25, %s59_s25 }
  0x16   :  { %30 = vadd.xlane.f32.xlu0 %v28_v2  ;;  %p102_p8 = scmp.ne.s32.totalorder %s59_s25, %s101_s26  ;;  %p107_p10 = scmp.lt.s32.totalorder %s101_s26, %s101_s26 }
  0x18   :  { %p108_p11 = por %p107_p10, %p106_p9 }
  0x1a   :  { %32 = vadd.xlane.f32.xlu0 %v29_v3  ;;  %p109_p12 = pnand %p108_p11, %p102_p8 }
  0xa3   :  { %v31_v4 = vpop.xlane.xlu0 %30 }
  0xa4   :  { %v34_v5 = vmul.f32 0.0078125, %v31_v4 }
  0xa6   :  { %v36_v6 = vadd.f32 1e-06, %v34_v5 }
  0xa7   :  { %v33_v7 = vpop.xlane.xlu0 %32 }
  0xa8   :  { %75 = vrsqrt.f32 %v36_v6  ;;  %v35_v8 = vmul.f32 0.0078125, %v33_v7 }
  0xaa   :  { %v37_v9 = vadd.f32 1e-06, %v35_v8 }
  0xac   :  { %77 = vrsqrt.f32 %v37_v9 }
  0xb2   :  { %v76_v10 = vpop.eup %75 }
  0xb3   :  { %v41_v12 = vmul.f32 %v76_v10, %v26_v0 }
  0xb5   :  { %v49_v13 = vmul.f32 %v70_v11, %v41_v12 }
  0xb6   :  { %v78_v14 = vpop.eup %77 }
  0xb7   :  { %v42_v15 = vmul.f32 %v78_v14, %v27_v1  ;;  %51 = vst [vmem:[#allocation5] sm:$0xff] %v49_v13 }
  0xb9   :  { %v50_v16 = vmul.f32 %v70_v11, %v42_v15 }
  0xbb   :  { %52 = vst [vmem:[#allocation5 + $0x8] sm:$0xff] %v50_v16 }
  0xbc   :  { %112 = shalt.err (!%p109_p12)
}
  0xbd   :  { %s113_s1 = scalar_lea.hbm %s181_s2, 256 }
  0xbe   :  { %p114_p13 = scmp.ne.s32.totalorder %s181_s2, %s113_s1  ;;  %p117_p0 = scmp.lt.u32.totalorder %s113_s1, %s181_s2 }
  0xc0   :  { %p119_p1 = pnand %p117_p0, %p114_p13 }
  0xc2   :  { %122 = shalt.err (!%p119_p1)
}
  0xc3   :  { %64 = dma.vmem_to_hbm [thread:$0]  %s59_s25, 256, %s181_s2, [#allocation4], %s128_s19, %s128_s19, %s129_s20  }
  0xc4   :  { %125 = dma.done.wait [#allocation4], 256  }
  0xc5   :  { %126 = vsyncadd [#allocation4], 4294967040 }
  0xc6   :  { %68 = vsyncpa [#allocation3], 1 }
  0xc7   :  { %69 = vsyncpa [#allocation4], 1 }

</bundles_post_ra>
